<compile_context>
chip_gen: v6e
topology: v6e:2x2x1
jax: 0.10.0
libtpu: 0.0.40
codegen_flags: <defaults>
</compile_context>

<pallas_src>
import functools

import numpy as np

import jax
import jax.numpy as jnp
from jax.experimental import pallas as pl
from jax.experimental.pallas import tpu as pltpu


def _round_up(x, m):
    return ((x + m - 1) // m) * m


def _vmem_tile_bytes(shape, dtype):
    """VMEM bytes for one buffer of `shape`/`dtype`, incl. (sublane, lane) padding."""
    dt = np.dtype(dtype)
    sub = 8 * (4 // dt.itemsize)          # 8 sublanes for f32, 16 for bf16
    rows = int(shape[-2]) if len(shape) >= 2 else 1
    cols = int(shape[-1])
    lead = 1
    for s in shape[:-2]:
        lead *= int(s)
    return lead * _round_up(rows, sub) * _round_up(cols, 128) * dt.itemsize


# ----------------------------------------------------------------------------
# Pallas kernel: fused MLP (Linear + ReLU per hidden layer) + final Linear->1
# ----------------------------------------------------------------------------
def _critic_head_kernel(n_hidden, *refs):
    # refs layout:
    #   refs[0]                      : x tile       (TB, D_in)   f32 (blocked)
    #   refs[1 + 2*l], refs[2 + 2*l] : W_l bf16 (D_l, H_l), b_l f32 (1, H_l)  [VMEM resident]
    #   refs[1 + 2*n_hidden]         : w_out_row    (1, H_last)  f32          [VMEM resident]
    #   refs[2 + 2*n_hidden]         : b_out        (1, 1) scalar in SMEM
    #   refs[-1]                     : o_ref        (1, 1, TB)   f32 (lane-dense)
    x_ref = refs[0]
    w_out_ref = refs[1 + 2 * n_hidden]
    b_out_ref = refs[2 + 2 * n_hidden]
    o_ref = refs[-1]

    h_f32 = x_ref[...].astype(jnp.float32)      # (TB, D_in)
    h_bf16 = h_f32.astype(jnp.bfloat16)         # in-kernel cast (VPU, hides under MXU)

    for l in range(n_hidden):
        w = refs[1 + 2 * l][...]                # (D_l, H_l) bf16
        b = refs[2 + 2 * l][...]                # (1, H_l)   f32
        acc = jnp.dot(h_bf16, w, preferred_element_type=jnp.float32)  # MXU, f32 acc
        h_f32 = jnp.maximum(acc + b, 0.0)       # bias + ReLU in f32 (VPU)
        h_bf16 = h_f32.astype(jnp.bfloat16)     # next layer's MXU input

    # Final Linear(H_last, 1): VPU multiply + cross-lane (XLU) reduction.
    w_row = w_out_ref[...]                      # (1, H_last) f32
    vals = jnp.sum(h_f32 * w_row, axis=-1) + b_out_ref[0, 0]   # (TB,)
    o_ref[...] = vals.reshape(o_ref.shape).astype(o_ref.dtype)


def critic_head_forward(x, hidden_params, out_w_row, out_b, *, block_batch=512):
    """x: (B, D_in) f32; hidden_params: list of (W (D_in, H), b (1, H)) f32;
    out_w_row: (1, H_last) f32 (the torch fc.weight row); out_b: (1, 1) f32.
    Returns (B, 1) f32."""
    n_hidden = len(hidden_params)
    B, d_in = x.shape
    block_batch = max(16, _round_up(int(block_batch), 16))   # bf16-safe sublane multiple

    dims = [d_in] + [int(w.shape[1]) for w, _ in hidden_params]
    max_dim = max(dims)
    h_last = dims[-1]

    # Resident weight footprint (single-buffered via memory_space=VMEM specs).
    weight_bytes = sum(
        _vmem_tile_bytes(w.shape, jnp.bfloat16) + _vmem_tile_bytes((1, w.shape[1]), jnp.float32)
        for w, _ in hidden_params
    )
    weight_bytes += _vmem_tile_bytes((1, h_last), jnp.float32)

    def vmem_needed(tb_):
        x_tiles = 2 * _vmem_tile_bytes((tb_, d_in), jnp.float32)        # double-buffered x
        o_tiles = 2 * _vmem_tile_bytes((1, 1, tb_), jnp.float32)        # double-buffered out
        acts = (2 * _vmem_tile_bytes((tb_, max_dim), jnp.float32)       # acc + h_f32
                + _vmem_tile_bytes((tb_, max_dim), jnp.bfloat16))       # + h_bf16
        return x_tiles + o_tiles + weight_bytes + acts

    # Generation-aware VMEM budget (v5e/v6e: 128 MiB, v7x: 64 MiB).
    try:
        vmem_cap = int(pltpu.get_tpu_info().vmem_capacity_bytes)
    except Exception:
        vmem_cap = 64 * 1024 * 1024                                     # v7x lower bound
    budget = int(0.75 * vmem_cap)

    # Batch tile: <= block_batch rows, multiple of 16 sublanes; >= 2 tiles for
    # large batches so the "parallel" axis can split across v7x TensorCores.
    min_tiles = 2 if B >= 256 else 1
    tb = max(16, min(block_batch, _round_up(pl.cdiv(B, min_tiles), 16)))
    while tb > 16 and vmem_needed(tb) > budget:
        tb = max(16, _round_up(tb // 2, 16))
    # TODO(synk): tile weights over K/N instead of shrinking tb when the hidden
    # layers themselves are too wide to stay VMEM-resident (very wide nets on v7x).

    num_tiles = pl.cdiv(B, tb)
    b_pad = num_tiles * tb
    if b_pad != B:
        # Only ragged batches incur a copy; evenly divisible batches go straight in.
        x = jnp.pad(x, ((0, b_pad - B), (0, 0)))

    vmem_limit = int(min(max(int(1.3 * vmem_needed(tb)), 16 * 1024 * 1024), budget))

    resident = pl.BlockSpec(memory_space=pltpu.MemorySpace.VMEM)        # single copy, one DMA
    args = [x]
    in_specs = [pl.BlockSpec((tb, d_in), lambda i: (i, 0))]             # pipelined x tiles
    for w, b in hidden_params:
        args.append(w.astype(jnp.bfloat16))
        in_specs.append(resident)
        args.append(b.reshape(1, -1).astype(jnp.float32))
        in_specs.append(resident)
    args.append(out_w_row.reshape(1, -1).astype(jnp.float32))
    in_specs.append(resident)
    args.append(out_b.reshape(1, 1).astype(jnp.float32))
    in_specs.append(pl.BlockSpec(memory_space=pltpu.MemorySpace.SMEM))  # scalar bias

    kernel = functools.partial(_critic_head_kernel, n_hidden)
    out_tiles = pl.pallas_call(
        kernel,
        grid=(num_tiles,),
        out_shape=jax.ShapeDtypeStruct((num_tiles, 1, tb), jnp.float32),
        in_specs=in_specs,
        # (1, 1, tb) block == full last-two dims -> rule-compliant, lane-dense store.
        out_specs=pl.BlockSpec((1, 1, tb), lambda i: (i, 0, 0)),
        compiler_params=pltpu.CompilerParams(
            dimension_semantics=("parallel",),
            vmem_limit_bytes=vmem_limit,
        ),
    )(*args)

    return out_tiles.reshape(b_pad, 1)[:B]


# ----------------------------------------------------------------------------
# Deterministic parameter init (mirrors nn.init.orthogonal_ / zero bias)
# ----------------------------------------------------------------------------
def _orthogonal(key, out_features, in_features):
    """Orthogonal matrix of shape (out_features, in_features), gain=1."""
    rows, cols = out_features, in_features
    flat = jax.random.normal(key, (max(rows, cols), min(rows, cols)), jnp.float32)
    q, r = jnp.linalg.qr(flat)
    d = jnp.diag(r)
    q = q * jnp.where(d == 0.0, 1.0, jnp.sign(d))   # avoid sign(0)=0 zeroing a column
    if rows < cols:
        q = q.T
    return q[:rows, :cols]


def init_critic_head_params(key, input_size, hidden_sizes):
    """Returns (hidden_params, out_w_row, out_b); hidden weights pre-transposed to
    (in, out) layout for the kernel; out_w_row is the torch (1, H_last) fc row.
    Note: hidden widths that are multiples of 128/256 fill the MXU best on v6e/v7x."""
    hidden_params = []
    d_in = input_size
    for h in hidden_sizes:
        key, sub = jax.random.split(key)
        w_torch = _orthogonal(sub, h, d_in)                     # torch layout (out, in)
        hidden_params.append((w_torch.T, jnp.zeros((1, h), jnp.float32)))
        d_in = h
    key, sub = jax.random.split(key)
    out_w_row = _orthogonal(sub, 1, d_in)                       # (1, d_in)
    out_b = jnp.zeros((1, 1), jnp.float32)                      # constant_(bias, 0)
    return hidden_params, out_w_row, out_b


# ----------------------------------------------------------------------------
# Reference (pure JAX, f32) for sanity checking
# ----------------------------------------------------------------------------
def critic_head_reference(x, hidden_params, out_w_row, out_b):
    h = x
    for w, b in hidden_params:
        h = jnp.maximum(h @ w + b, 0.0)
    return h @ out_w_row.reshape(1, -1).T + out_b.reshape(1, 1)


if __name__ == "__main__":
    batch = 2
    input_size = 32
    hidden_sizes = (32, 32)

    key = jax.random.PRNGKey(0)
    key, xkey, pkey = jax.random.split(key, 3)
    x = jax.random.normal(xkey, (batch, input_size), jnp.float32)

    hidden_params, out_w_row, out_b = init_critic_head_params(
        pkey, input_size, hidden_sizes
    )

    forward = jax.jit(critic_head_forward)
    out = jax.block_until_ready(forward(x, hidden_params, out_w_row, out_b))

    ref = critic_head_reference(x, hidden_params, out_w_row, out_b)
    assert out.shape == (batch, 1)
    # bf16 MXU inputs with f32 accumulation -> relaxed tolerance vs f32 reference.
    assert jnp.allclose(out, ref, atol=3e-2, rtol=3e-2), (out, ref)

    print("KERNEL_OK")
</pallas_src>

<mosaic_0001>
module attributes {stable_mosaic.version = 11 : i64} {
  func.func @_critic_head_kernel(%arg0: i32, %arg1: memref<16x32xf32, #tpu.memory_space<vmem>>, %arg2: memref<32x32xbf16, #tpu.memory_space<vmem>>, %arg3: memref<1x32xf32, #tpu.memory_space<vmem>>, %arg4: memref<32x32xbf16, #tpu.memory_space<vmem>>, %arg5: memref<1x32xf32, #tpu.memory_space<vmem>>, %arg6: memref<1x32xf32, #tpu.memory_space<vmem>>, %arg7: memref<1x1xf32, #tpu.memory_space<smem>>, %arg8: memref<1x1x16xf32, #tpu.memory_space<vmem>>) attributes {dimension_semantics = [#tpu.dimension_semantics<parallel>], iteration_bounds = array<i64: 1>, scalar_prefetch = 0 : i64, scratch_operands = 0 : i64, tpu.core_type = #tpu.core_type<tc>, window_params = [{transform_indices = @transform_0, window_bounds = array<i64: 16, 32>}, {pipeline_mode = #tpu.pipeline_mode<synchronous>, transform_indices = @transform_1, window_bounds = array<i64: 32, 32>}, {pipeline_mode = #tpu.pipeline_mode<synchronous>, transform_indices = @transform_2, window_bounds = array<i64: 1, 32>}, {pipeline_mode = #tpu.pipeline_mode<synchronous>, transform_indices = @transform_3, window_bounds = array<i64: 32, 32>}, {pipeline_mode = #tpu.pipeline_mode<synchronous>, transform_indices = @transform_4, window_bounds = array<i64: 1, 32>}, {pipeline_mode = #tpu.pipeline_mode<synchronous>, transform_indices = @transform_5, window_bounds = array<i64: 1, 32>}, {transform_indices = @transform_6, window_bounds = array<i64: 1, 1>}, {transform_indices = @transform_7, window_bounds = array<i64: 1, 1, 16>}]} {
    %c0 = arith.constant 0 : index
    %c0_0 = arith.constant 0 : index
    %0 = vector.load %arg1[%c0, %c0_0] : memref<16x32xf32, #tpu.memory_space<vmem>>, vector<16x32xf32>
    %1 = arith.truncf %0 : vector<16x32xf32> to vector<16x32xbf16>
    %c0_1 = arith.constant 0 : index
    %c0_2 = arith.constant 0 : index
    %2 = vector.load %arg2[%c0_1, %c0_2] : memref<32x32xbf16, #tpu.memory_space<vmem>>, vector<32x32xbf16>
    %c0_3 = arith.constant 0 : index
    %c0_4 = arith.constant 0 : index
    %3 = vector.load %arg3[%c0_3, %c0_4] : memref<1x32xf32, #tpu.memory_space<vmem>>, vector<1x32xf32>
    %cst = arith.constant dense<0.000000e+00> : vector<16x32xf32>
    %4 = tpu.matmul %1, %2, %cst {dimension_numbers = #tpu.dot_dimension_numbers<[1], [0], [0], [1], [0, 0, 1, 1], [], []>} : vector<16x32xbf16>, vector<32x32xbf16>, vector<16x32xf32> -> vector<16x32xf32>
    %5 = vector.broadcast %3 : vector<1x32xf32> to vector<16x32xf32>
    %6 = arith.addf %4, %5 : vector<16x32xf32>
    %cst_5 = arith.constant 0.000000e+00 : f32
    %7 = vector.broadcast %cst_5 : f32 to vector<16x32xf32>
    %8 = arith.maximumf %6, %7 : vector<16x32xf32>
    %9 = arith.truncf %8 : vector<16x32xf32> to vector<16x32xbf16>
    %c0_6 = arith.constant 0 : index
    %c0_7 = arith.constant 0 : index
    %10 = vector.load %arg4[%c0_6, %c0_7] : memref<32x32xbf16, #tpu.memory_space<vmem>>, vector<32x32xbf16>
    %c0_8 = arith.constant 0 : index
    %c0_9 = arith.constant 0 : index
    %11 = vector.load %arg5[%c0_8, %c0_9] : memref<1x32xf32, #tpu.memory_space<vmem>>, vector<1x32xf32>
    %cst_10 = arith.constant dense<0.000000e+00> : vector<16x32xf32>
    %12 = tpu.matmul %9, %10, %cst_10 {dimension_numbers = #tpu.dot_dimension_numbers<[1], [0], [0], [1], [0, 0, 1, 1], [], []>} : vector<16x32xbf16>, vector<32x32xbf16>, vector<16x32xf32> -> vector<16x32xf32>
    %13 = vector.broadcast %11 : vector<1x32xf32> to vector<16x32xf32>
    %14 = arith.addf %12, %13 : vector<16x32xf32>
    %cst_11 = arith.constant 0.000000e+00 : f32
    %15 = vector.broadcast %cst_11 : f32 to vector<16x32xf32>
    %16 = arith.maximumf %14, %15 : vector<16x32xf32>
    %c0_12 = arith.constant 0 : index
    %c0_13 = arith.constant 0 : index
    %17 = vector.load %arg6[%c0_12, %c0_13] : memref<1x32xf32, #tpu.memory_space<vmem>>, vector<1x32xf32>
    %18 = vector.broadcast %17 : vector<1x32xf32> to vector<16x32xf32>
    %19 = arith.mulf %16, %18 : vector<16x32xf32>
    %cst_14 = arith.constant dense<0.000000e+00> : vector<16xf32>
    %20 = vector.multi_reduction <add>, %19, %cst_14 [1] : vector<16x32xf32> to vector<16xf32>
    %c0_15 = arith.constant 0 : index
    %c0_16 = arith.constant 0 : index
    %21 = memref.load %arg7[%c0_15, %c0_16] : memref<1x1xf32, #tpu.memory_space<smem>>
    %22 = vector.broadcast %21 : f32 to vector<16xf32>
    %23 = arith.addf %20, %22 : vector<16xf32>
    %24 = vector.shape_cast %23 : vector<16xf32> to vector<1x1x16xf32>
    %c0_17 = arith.constant 0 : index
    %c0_18 = arith.constant 0 : index
    %c0_19 = arith.constant 0 : index
    %25 = vector.load %arg8[%c0_17, %c0_18, %c0_19] : memref<1x1x16xf32, #tpu.memory_space<vmem>>, vector<1x1x16xf32>
    tpu.vector_store %arg8[%c0_17, %c0_18, %c0_19], %24 {strides = array<i32>} : memref<1x1x16xf32, #tpu.memory_space<vmem>>, vector<1x1x16xf32>,
    return
  }
  func.func @transform_0(%arg0: i32) -> (i32, i32) {
    %c0_i32 = arith.constant 0 : i32
    %c0_i32_0 = arith.constant 0 : i32
    return %arg0, %c0_i32 : i32, i32
  }
  func.func @transform_1(%arg0: i32) -> (i32, i32) {
    %c0_i32 = arith.constant 0 : i32
    %c0_i32_0 = arith.constant 0 : i32
    %c0_i32_1 = arith.constant 0 : i32
    return %c0_i32, %c0_i32_0 : i32, i32
  }
  func.func @transform_2(%arg0: i32) -> (i32, i32) {
    %c0_i32 = arith.constant 0 : i32
    %c0_i32_0 = arith.constant 0 : i32
    %c0_i32_1 = arith.constant 0 : i32
    return %c0_i32, %c0_i32_0 : i32, i32
  }
  func.func @transform_3(%arg0: i32) -> (i32, i32) {
    %c0_i32 = arith.constant 0 : i32
    %c0_i32_0 = arith.constant 0 : i32
    %c0_i32_1 = arith.constant 0 : i32
    return %c0_i32, %c0_i32_0 : i32, i32
  }
  func.func @transform_4(%arg0: i32) -> (i32, i32) {
    %c0_i32 = arith.constant 0 : i32
    %c0_i32_0 = arith.constant 0 : i32
    %c0_i32_1 = arith.constant 0 : i32
    return %c0_i32, %c0_i32_0 : i32, i32
  }
  func.func @transform_5(%arg0: i32) -> (i32, i32) {
    %c0_i32 = arith.constant 0 : i32
    %c0_i32_0 = arith.constant 0 : i32
    %c0_i32_1 = arith.constant 0 : i32
    return %c0_i32, %c0_i32_0 : i32, i32
  }
  func.func @transform_6(%arg0: i32) -> (i32, i32) {
    %c0_i32 = arith.constant 0 : i32
    %c0_i32_0 = arith.constant 0 : i32
    %c0_i32_1 = arith.constant 0 : i32
    return %c0_i32, %c0_i32_0 : i32, i32
  }
  func.func @transform_7(%arg0: i32) -> (i32, i32, i32) {
    %c0_i32 = arith.constant 0 : i32
    %c0_i32_0 = arith.constant 0 : i32
    %c0_i32_1 = arith.constant 0 : i32
    return %arg0, %c0_i32, %c0_i32_0 : i32, i32, i32
  }
}

</mosaic_0001>

<bundles_post_ra>
// kernel: critic_head_forward.1
= control target key start
LH: loop header
LB: loop body
LE: loop exit
PB: predicated region body
PF: predicated region fallthrough
CT: control target
= control target key end

     0   :  { %v249_v0 = vmov 0.0   ;;  %vm250_vm0 = vmmov 0   ;;  %vm54_vm1 = vcmask 261120   ;;  %v192_v32 = vlaneseq  ;;  %s328_s1 = inlined_call_operand.vmem [shape: bf16[32,32], index: 1, kind: input, shape index: {}]   ;;  %s329_s0 = inlined_call_operand.vmem [shape: f32[16,32], index: 0, kind: input, shape index: {}]   ;;  %s330_s3 = inlined_call_operand.vmem [shape: bf16[32,32], index: 3, kind: input, shape index: {}]   ;;  %s331_s2 = inlined_call_operand.vmem [shape: f32[1,32], index: 2, kind: input, shape index: {}]   ;;  %s332_s4 = inlined_call_operand.vmem [shape: f32[1,32], index: 4, kind: input, shape index: {}]   ;;  %s333_s5 = inlined_call_operand.vmem [shape: f32[1,32], index: 5, kind: input, shape index: {}]   ;;  %s334_s6 = inlined_call_operand.<no memory space> [shape: f32[1,1], index: 6, kind: input, shape index: {}]   ;;  %s335_s7 = inlined_call_operand.vmem [shape: f32[1,1,16], index: 7, kind: output, shape index: {}]  }
   0x1   :  { %227 = vmatprep.subr.bf16.mxu0 %v249_v0  ;;  %v245_v1 = vld [vmem:[%s328_s1 + $0x8] sm:$0xff]   ;;  %231 = vmatprep.mubr.msk.bf16.mxu0 %vm250_vm0, %v249_v0  ;;  %v246_v2 = vld [vmem:[%s328_s1] sm:$0xff]   ;;  %v187_v36 = vstv %s334_s6  ;;  %vm203_vm2 = vcmask 130112   ;;  %vm206_vm3 = vcmask 122880  }
   0x2   :  { %235 = vmatprep.subr.bf16.mxu1 %v249_v0  ;;  %239 = vmatprep.mubr.msk.bf16.mxu1 %vm250_vm0, %v249_v0  ;;  %v28_v3 = vld [vmem:[%s329_s0] sm:$0xff]  ;;  %v29_v4 = vld [vmem:[%s329_s0 + $0x8] sm:$0xff]  ;;  %v193_v33 = vand.u32 127, %v192_v32  ;;  %v195_v34 = vshrl.u32 %v192_v32, 7 }
   0x3   :  { %228 = vmatpush3.bf16.msra.mxu0 %v245_v1  ;;  %v30_v5 = vpack.c.bf16 %v29_v4, %v28_v3  ;;  %v247_v6 = vld [vmem:[%s330_s3 + $0x8] sm:$0xff]   ;;  %v248_v7 = vld [vmem:[%s330_s3] sm:$0xff]  }
   0x4   :  { %229 = vmatprep.subr.bf16.mxu0 %v249_v0  ;;  %236 = vmatpush3.bf16.msra.mxu1 %v247_v6  ;;  %v212_v8 = vld [vmem:[%s331_s2] ss:$0 sm:$0xff]  ;;  %v198_v35 = vadd.s32 4294967288, %v193_v33  ;;  %v196_v38 = vsub.s32 %v193_v33, %v195_v34 }
   0x5   :  { %237 = vmatprep.subr.bf16.mxu1 %v249_v0  ;;  %v216_v18 = vld [vmem:[%s332_s4] ss:$0 sm:$0xff] }
   0x6   :  { %v220_v22 = vld [vmem:[%s333_s5] ss:$0 sm:$0xff]  ;;  %v201_v40 = vsub.s32 %v198_v35, %v195_v34 }
   0x7   :  { %230 = vmatpush3.bf16.msra.mxu0 %v246_v2 }
   0x8   :  { %238 = vmatpush3.bf16.msra.mxu1 %v248_v7 }
   0xa   :  { %232 = vmatmul.mubr.msk.bf16.vlgmr.msra.gmra.mxu0 %vm54_vm1, %v30_v5 }
  0xca   :  { %v92_v9 = vpop.f32.mrf.mxu0 }
  0xcb   :  { %v93_v11 = vadd.f32 %v212_v8, %v92_v9 }
  0xcc   :  { %v233_v10 = vpop.f32.mrf.mxu0 }
  0xcd   :  { %v99_v15 = vmax.f32 %v93_v11, 0.0 }
  0xce   :  { %v95_v12 = vpop.f32.mrf.mxu0 }
  0xcf   :  { %v96_v13 = vadd.f32 %v212_v8, %v95_v12 }
  0xd0   :  { %v234_v14 = vpop.f32.mrf.mxu0 }
  0xd1   :  { %v100_v16 = vmax.f32 %v96_v13, 0.0 }
  0xd3   :  { %v101_v17 = vpack.c.bf16 %v100_v16, %v99_v15 }
  0xd5   :  { %240 = vmatmul.mubr.msk.bf16.vlgmr.msra.gmra.mxu1 %vm54_vm1, %v101_v17 }
 0x195   :  { %v162_v19 = vpop.f32.mrf.mxu1 }
 0x196   :  { %v163_v20 = vadd.f32 %v216_v18, %v162_v19 }
 0x197   :  { %v241_v21 = vpop.f32.mrf.mxu1 }
 0x198   :  { %v169_v23 = vmax.f32 %v163_v20, 0.0 }
 0x199   :  { %v165_v24 = vpop.f32.mrf.mxu1 }
 0x19a   :  { %v166_v25 = vadd.f32 %v216_v18, %v165_v24  ;;  %v178_v26 = vmul.f32 %v220_v22, %v169_v23 }
 0x19b   :  { %v242_v27 = vpop.f32.mrf.mxu1 }
 0x19c   :  { %v170_v28 = vmax.f32 %v166_v25, 0.0  ;;  %v180_v29 = vsel %vm54_vm1, %v178_v26, 0.0 }
 0x19d   :  { %181 = vadd.xlane.f32.xlu0 %v180_v29 }
 0x19e   :  { %v179_v30 = vmul.f32 %v220_v22, %v170_v28 }
 0x1a0   :  { %v183_v31 = vsel %vm54_vm1, %v179_v30, 0.0 }
 0x1a1   :  { %184 = vadd.xlane.f32.xlu0 %v183_v31 }
 0x226   :  { %v182_v37 = vpop.xlane.xlu0 %181 }
 0x227   :  { %v188_v39 = vadd.f32 %v187_v36, %v182_v37 }
 0x229   :  { %v197_v43 = vrot.slane %v188_v39, %v196_v38 }
 0x22a   :  { %v185_v41 = vpop.xlane.xlu0 %184 }
 0x22b   :  { %v189_v42 = vadd.f32 %v187_v36, %v185_v41 }
 0x22d   :  { %v202_v44 = vrot.slane %v189_v42, %v201_v40 }
 0x22f   :  { %v204_v45 = vsel %vm203_vm2, %v202_v44, %v197_v43 }
 0x230   :  { %207 = vst.msk [vmem:[%s335_s7] sm:$0x1] %vm206_vm3, %v204_v45 }

</bundles_post_ra>
